<compile_context>
chip_gen: v5e
topology: v5e:2x2
jax: 0.10.0
libtpu: 0.0.40
codegen_flags: <defaults>
</compile_context>

<pallas_src>
import functools

import jax
import jax.numpy as jnp
from jax.experimental import pallas as pl
from jax.experimental.pallas import tpu as pltpu

EPS = 1e-5
LANE = 128
SUBLANE = 8
NUM_LAYERS = 4


def _round_up(n, m):
    return (n + m - 1) // m * m


def _groupnorm1(h, gamma, beta, inv_n):
    """GroupNorm(num_groups=1) over the last axis of a (TB, Hp) fp32 block.

    Single pass: var = E[x^2] - mean^2, gamma folded into the scale.
    `inv_n` = 1 / real_hidden_dim; padded feature columns are guaranteed zero
    on entry so they drop out of both sums, and gamma/beta are zero there so
    padded columns stay exactly zero on exit.
    """
    s = jnp.sum(h, axis=-1, keepdims=True)
    sq = jnp.sum(h * h, axis=-1, keepdims=True)
    mean = s * inv_n
    var = sq * inv_n - mean * mean
    scale = jax.lax.rsqrt(var + EPS) * gamma          # (TB,1)*(1,Hp) -> (TB,Hp)
    return h * scale + (beta - mean * scale)


def fraudnet_kernel(x_ref, w_in_ref, b_in_ref, g_in_ref, be_in_ref,
                    w_h_ref, b_h_ref, g_h_ref, be_h_ref,
                    w_fc_ref, b_fc_ref, out_ref, *, num_layers, inv_h):
    # input block: Linear -> ReLU -> GroupNorm(1, H)
    x = x_ref[...].astype(jnp.bfloat16)                        # (TB, Dp)
    h = jnp.dot(x, w_in_ref[...], preferred_element_type=jnp.float32)
    h = jnp.maximum(h + b_in_ref[...], 0.0)
    h = _groupnorm1(h, g_in_ref[...], be_in_ref[...], inv_h)

    # hidden blocks: [Linear -> ReLU -> GroupNorm -> Dropout] x num_layers
    # Dropout(0.5) is identity in eval/inference mode.
    for i in range(num_layers):                                # static unroll
        h = jnp.dot(h.astype(jnp.bfloat16), w_h_ref[i],
                    preferred_element_type=jnp.float32)
        h = jnp.maximum(h + b_h_ref[i], 0.0)
        h = _groupnorm1(h, g_h_ref[i], be_h_ref[i], inv_h)

    # classifier head: Linear(H, 2), output lanes padded to 128 (dense stores)
    out_ref[...] = (jnp.dot(h.astype(jnp.bfloat16), w_fc_ref[...],
                            preferred_element_type=jnp.float32)
                    + b_fc_ref[...])


def _pad2(a, rows, cols):
    return jnp.pad(a, ((0, rows - a.shape[0]), (0, cols - a.shape[1])))


def fraudnet_forward(x, params, *, block_b=128):
    (w_in, b_in, g_in, be_in, w_h, b_h, g_h, be_h, w_fc, b_fc) = params
    B, D = x.shape
    L, H, _ = w_h.shape
    n_out = w_fc.shape[1]

    Dp = _round_up(D, LANE)
    Hp = _round_up(H, LANE)
    Op = _round_up(n_out, LANE)
    TB = min(block_b, _round_up(B, SUBLANE))
    Bp = _round_up(B, TB)

    # Zero-pad everything to lane/sublane-aligned shapes; weights -> bf16.
    xp = _pad2(x.astype(jnp.float32), Bp, Dp)
    w_in_p = _pad2(w_in, Dp, Hp).astype(jnp.bfloat16)
    b_in_p = _pad2(b_in.reshape(1, H), 1, Hp)
    g_in_p = _pad2(g_in.reshape(1, H), 1, Hp)
    be_in_p = _pad2(be_in.reshape(1, H), 1, Hp)

    w_h_p = jnp.pad(w_h, ((0, 0), (0, Hp - H), (0, Hp - H))).astype(jnp.bfloat16)
    b_h_p = jnp.pad(b_h.reshape(L, 1, H), ((0, 0), (0, 0), (0, Hp - H)))
    g_h_p = jnp.pad(g_h.reshape(L, 1, H), ((0, 0), (0, 0), (0, Hp - H)))
    be_h_p = jnp.pad(be_h.reshape(L, 1, H), ((0, 0), (0, 0), (0, Hp - H)))

    w_fc_p = _pad2(w_fc, Hp, Op).astype(jnp.bfloat16)
    b_fc_p = _pad2(b_fc.reshape(1, n_out), 1, Op)

    const2 = lambda i: (0, 0)
    const3 = lambda i: (0, 0, 0)
    in_specs = [
        pl.BlockSpec((TB, Dp), lambda i: (i, 0)),      # x tile (pipelined)
        pl.BlockSpec((Dp, Hp), const2),                # w_in   (resident)
        pl.BlockSpec((1, Hp), const2),                 # b_in
        pl.BlockSpec((1, Hp), const2),                 # gamma_in
        pl.BlockSpec((1, Hp), const2),                 # beta_in
        pl.BlockSpec((L, Hp, Hp), const3),             # hidden weights
        pl.BlockSpec((L, 1, Hp), const3),              # hidden biases
        pl.BlockSpec((L, 1, Hp), const3),              # hidden gammas
        pl.BlockSpec((L, 1, Hp), const3),              # hidden betas
        pl.BlockSpec((Hp, Op), const2),                # w_fc
        pl.BlockSpec((1, Op), const2),                 # b_fc
    ]
    out_spec = pl.BlockSpec((TB, Op), lambda i: (i, 0))

    # Cost estimate and VMEM budget.
    flops = 2 * Bp * (Dp * Hp + L * Hp * Hp + Hp * Op)
    weight_bytes = (w_in_p.size + w_h_p.size + w_fc_p.size) * 2
    small_bytes = (b_in_p.size + g_in_p.size + be_in_p.size + b_h_p.size
                   + g_h_p.size + be_h_p.size + b_fc_p.size) * 4
    io_bytes = xp.size * 4 + Bp * Op * 4
    cost = pl.CostEstimate(flops=flops, transcendentals=0,
                           bytes_accessed=weight_bytes + small_bytes + io_bytes)

    tile_bytes = TB * (Dp + Op) * 4          # double-buffered x / out tiles
    act_bytes = 6 * TB * Hp * 4              # activation working-set headroom
    vmem_limit = int(min(
        64 * 1024 * 1024,
        max(32 * 1024 * 1024,
            weight_bytes + small_bytes + 4 * tile_bytes + act_bytes + (4 << 20))))

    kernel = functools.partial(fraudnet_kernel, num_layers=L, inv_h=1.0 / H)
    out = pl.pallas_call(
        kernel,
        out_shape=jax.ShapeDtypeStruct((Bp, Op), jnp.float32),
        grid=(Bp // TB,),
        in_specs=in_specs,
        out_specs=out_spec,
        compiler_params=pltpu.CompilerParams(
            dimension_semantics=("parallel",),
            vmem_limit_bytes=vmem_limit),
        cost_estimate=cost,
    )(xp, w_in_p, b_in_p, g_in_p, be_in_p,
      w_h_p, b_h_p, g_h_p, be_h_p, w_fc_p, b_fc_p)

    return out[:B, :n_out]


def ref_forward(x, params):
    (w_in, b_in, g_in, be_in, w_h, b_h, g_h, be_h, w_fc, b_fc) = params

    def gn(h, g, b):
        m = h.mean(-1, keepdims=True)
        v = ((h - m) ** 2).mean(-1, keepdims=True)
        return (h - m) / jnp.sqrt(v + EPS) * g + b

    h = jnp.maximum(x @ w_in + b_in, 0.0)
    h = gn(h, g_in, be_in)
    for i in range(w_h.shape[0]):
        h = jnp.maximum(h @ w_h[i] + b_h[i], 0.0)
        h = gn(h, g_h[i], be_h[i])
    return h @ w_fc + b_fc


def init_params(key, input_dim, hidden_dim, num_layers=NUM_LAYERS):
    ks = jax.random.split(key, 4 + 2 * num_layers)
    w_in = jax.random.normal(ks[0], (input_dim, hidden_dim), jnp.float32) * 0.1
    b_in = jax.random.normal(ks[1], (hidden_dim,), jnp.float32) * 0.1
    g_in = jnp.ones((hidden_dim,), jnp.float32)     # GroupNorm affine: gamma=1
    be_in = jnp.zeros((hidden_dim,), jnp.float32)   # beta=0 (PyTorch default)

    w_h = jnp.stack([jax.random.normal(ks[2 + 2 * i],
                                       (hidden_dim, hidden_dim),
                                       jnp.float32) * 0.1
                     for i in range(num_layers)])
    b_h = jnp.stack([jax.random.normal(ks[3 + 2 * i], (hidden_dim,),
                                       jnp.float32) * 0.1
                     for i in range(num_layers)])
    g_h = jnp.ones((num_layers, hidden_dim), jnp.float32)
    be_h = jnp.zeros((num_layers, hidden_dim), jnp.float32)

    w_fc = jax.random.normal(ks[-2], (hidden_dim, 2), jnp.float32) * 0.1
    b_fc = jax.random.normal(ks[-1], (2,), jnp.float32) * 0.1
    return (w_in, b_in, g_in, be_in, w_h, b_h, g_h, be_h, w_fc, b_fc)


if __name__ == "__main__":
    B, INPUT_DIM, HIDDEN_DIM = 8, 16, 32

    key = jax.random.PRNGKey(0)
    kx, kp = jax.random.split(key)
    x = jax.random.normal(kx, (B, INPUT_DIM), jnp.float32)
    params = init_params(kp, INPUT_DIM, HIDDEN_DIM)

    out = jax.block_until_ready(fraudnet_forward(x, params))
    ref = ref_forward(x, params)

    assert out.shape == (B, 2), out.shape
    err = float(jnp.max(jnp.abs(out - ref)))
    # bf16 matmul inputs with fp32 accumulation -> loosened tolerance vs fp32 ref
    assert err < 5e-2, err
    print("KERNEL_OK")
</pallas_src>

<mosaic_0001>
module attributes {stable_mosaic.version = 11 : i64} {
  func.func @fraudnet_kernel(%arg0: i32, %arg1: memref<8x128xf32, #tpu.memory_space<vmem>>, %arg2: memref<128x128xbf16, #tpu.memory_space<vmem>>, %arg3: memref<1x128xf32, #tpu.memory_space<vmem>>, %arg4: memref<1x128xf32, #tpu.memory_space<vmem>>, %arg5: memref<1x128xf32, #tpu.memory_space<vmem>>, %arg6: memref<4x128x128xbf16, #tpu.memory_space<vmem>>, %arg7: memref<4x1x128xf32, #tpu.memory_space<vmem>>, %arg8: memref<4x1x128xf32, #tpu.memory_space<vmem>>, %arg9: memref<4x1x128xf32, #tpu.memory_space<vmem>>, %arg10: memref<128x128xbf16, #tpu.memory_space<vmem>>, %arg11: memref<1x128xf32, #tpu.memory_space<vmem>>, %arg12: memref<8x128xf32, #tpu.memory_space<vmem>>) attributes {dimension_semantics = [#tpu.dimension_semantics<parallel>], iteration_bounds = array<i64: 1>, scalar_prefetch = 0 : i64, scratch_operands = 0 : i64, tpu.core_type = #tpu.core_type<tc>, window_params = [{transform_indices = @transform_0, window_bounds = array<i64: 8, 128>}, {pipeline_mode = #tpu.pipeline_mode<synchronous>, transform_indices = @transform_1, window_bounds = array<i64: 128, 128>}, {pipeline_mode = #tpu.pipeline_mode<synchronous>, transform_indices = @transform_2, window_bounds = array<i64: 1, 128>}, {pipeline_mode = #tpu.pipeline_mode<synchronous>, transform_indices = @transform_3, window_bounds = array<i64: 1, 128>}, {pipeline_mode = #tpu.pipeline_mode<synchronous>, transform_indices = @transform_4, window_bounds = array<i64: 1, 128>}, {pipeline_mode = #tpu.pipeline_mode<synchronous>, transform_indices = @transform_5, window_bounds = array<i64: 4, 128, 128>}, {pipeline_mode = #tpu.pipeline_mode<synchronous>, transform_indices = @transform_6, window_bounds = array<i64: 4, 1, 128>}, {pipeline_mode = #tpu.pipeline_mode<synchronous>, transform_indices = @transform_7, window_bounds = array<i64: 4, 1, 128>}, {pipeline_mode = #tpu.pipeline_mode<synchronous>, transform_indices = @transform_8, window_bounds = array<i64: 4, 1, 128>}, {pipeline_mode = #tpu.pipeline_mode<synchronous>, transform_indices = @transform_9, window_bounds = array<i64: 128, 128>}, {pipeline_mode = #tpu.pipeline_mode<synchronous>, transform_indices = @transform_10, window_bounds = array<i64: 1, 128>}, {transform_indices = @transform_11, window_bounds = array<i64: 8, 128>}]} {
    %c0 = arith.constant 0 : index
    %c0_0 = arith.constant 0 : index
    %0 = vector.load %arg1[%c0, %c0_0] : memref<8x128xf32, #tpu.memory_space<vmem>>, vector<8x128xf32>
    %1 = arith.truncf %0 : vector<8x128xf32> to vector<8x128xbf16>
    %c0_1 = arith.constant 0 : index
    %c0_2 = arith.constant 0 : index
    %2 = vector.load %arg2[%c0_1, %c0_2] : memref<128x128xbf16, #tpu.memory_space<vmem>>, vector<128x128xbf16>
    %cst = arith.constant dense<0.000000e+00> : vector<8x128xf32>
    %3 = tpu.matmul %1, %2, %cst {dimension_numbers = #tpu.dot_dimension_numbers<[1], [0], [0], [1], [0, 0, 1, 1], [], []>} : vector<8x128xbf16>, vector<128x128xbf16>, vector<8x128xf32> -> vector<8x128xf32>
    %c0_3 = arith.constant 0 : index
    %c0_4 = arith.constant 0 : index
    %4 = vector.load %arg3[%c0_3, %c0_4] : memref<1x128xf32, #tpu.memory_space<vmem>>, vector<1x128xf32>
    %5 = vector.broadcast %4 : vector<1x128xf32> to vector<8x128xf32>
    %6 = arith.addf %3, %5 : vector<8x128xf32>
    %cst_5 = arith.constant 0.000000e+00 : f32
    %7 = vector.broadcast %cst_5 : f32 to vector<8x128xf32>
    %8 = arith.maximumf %6, %7 : vector<8x128xf32>
    %c0_6 = arith.constant 0 : index
    %c0_7 = arith.constant 0 : index
    %9 = vector.load %arg4[%c0_6, %c0_7] : memref<1x128xf32, #tpu.memory_space<vmem>>, vector<1x128xf32>
    %c0_8 = arith.constant 0 : index
    %c0_9 = arith.constant 0 : index
    %10 = vector.load %arg5[%c0_8, %c0_9] : memref<1x128xf32, #tpu.memory_space<vmem>>, vector<1x128xf32>
    %cst_10 = arith.constant dense<0.000000e+00> : vector<8xf32>
    %11 = vector.multi_reduction <add>, %8, %cst_10 [1] : vector<8x128xf32> to vector<8xf32>
    %12 = vector.shape_cast %11 : vector<8xf32> to vector<8x1xf32>
    %13 = arith.mulf %8, %8 : vector<8x128xf32>
    %cst_11 = arith.constant dense<0.000000e+00> : vector<8xf32>
    %14 = vector.multi_reduction <add>, %13, %cst_11 [1] : vector<8x128xf32> to vector<8xf32>
    %15 = vector.shape_cast %14 : vector<8xf32> to vector<8x1xf32>
    %cst_12 = arith.constant 3.125000e-02 : f32
    %16 = vector.broadcast %cst_12 : f32 to vector<8x1xf32>
    %17 = arith.mulf %12, %16 : vector<8x1xf32>
    %cst_13 = arith.constant 3.125000e-02 : f32
    %18 = vector.broadcast %cst_13 : f32 to vector<8x1xf32>
    %19 = arith.mulf %15, %18 : vector<8x1xf32>
    %20 = arith.mulf %17, %17 : vector<8x1xf32>
    %21 = arith.subf %19, %20 : vector<8x1xf32>
    %cst_14 = arith.constant 9.99999974E-6 : f32
    %22 = vector.broadcast %cst_14 : f32 to vector<8x1xf32>
    %23 = arith.addf %21, %22 : vector<8x1xf32>
    %24 = math.rsqrt %23 : vector<8x1xf32>
    %25 = vector.broadcast %24 : vector<8x1xf32> to vector<8x128xf32>
    %26 = vector.broadcast %9 : vector<1x128xf32> to vector<8x128xf32>
    %27 = arith.mulf %25, %26 : vector<8x128xf32>
    %28 = arith.mulf %8, %27 : vector<8x128xf32>
    %29 = vector.broadcast %17 : vector<8x1xf32> to vector<8x128xf32>
    %30 = arith.mulf %29, %27 : vector<8x128xf32>
    %31 = vector.broadcast %10 : vector<1x128xf32> to vector<8x128xf32>
    %32 = arith.subf %31, %30 : vector<8x128xf32>
    %33 = arith.addf %28, %32 : vector<8x128xf32>
    %34 = arith.truncf %33 : vector<8x128xf32> to vector<8x128xbf16>
    %c0_15 = arith.constant 0 : index
    %c0_16 = arith.constant 0 : index
    %c0_17 = arith.constant 0 : index
    %35 = vector.load %arg6[%c0_15, %c0_16, %c0_17] : memref<4x128x128xbf16, #tpu.memory_space<vmem>>, vector<1x128x128xbf16>
    %36 = vector.shape_cast %35 : vector<1x128x128xbf16> to vector<128x128xbf16>
    %cst_18 = arith.constant dense<0.000000e+00> : vector<8x128xf32>
    %37 = tpu.matmul %34, %36, %cst_18 {dimension_numbers = #tpu.dot_dimension_numbers<[1], [0], [0], [1], [0, 0, 1, 1], [], []>} : vector<8x128xbf16>, vector<128x128xbf16>, vector<8x128xf32> -> vector<8x128xf32>
    %c0_19 = arith.constant 0 : index
    %c0_20 = arith.constant 0 : index
    %c0_21 = arith.constant 0 : index
    %38 = vector.load %arg7[%c0_19, %c0_20, %c0_21] : memref<4x1x128xf32, #tpu.memory_space<vmem>>, vector<1x1x128xf32>
    %39 = vector.shape_cast %38 : vector<1x1x128xf32> to vector<1x128xf32>
    %40 = vector.broadcast %39 : vector<1x128xf32> to vector<8x128xf32>
    %41 = arith.addf %37, %40 : vector<8x128xf32>
    %cst_22 = arith.constant 0.000000e+00 : f32
    %42 = vector.broadcast %cst_22 : f32 to vector<8x128xf32>
    %43 = arith.maximumf %41, %42 : vector<8x128xf32>
    %c0_23 = arith.constant 0 : index
    %c0_24 = arith.constant 0 : index
    %c0_25 = arith.constant 0 : index
    %44 = vector.load %arg8[%c0_23, %c0_24, %c0_25] : memref<4x1x128xf32, #tpu.memory_space<vmem>>, vector<1x1x128xf32>
    %45 = vector.shape_cast %44 : vector<1x1x128xf32> to vector<1x128xf32>
    %c0_26 = arith.constant 0 : index
    %c0_27 = arith.constant 0 : index
    %c0_28 = arith.constant 0 : index
    %46 = vector.load %arg9[%c0_26, %c0_27, %c0_28] : memref<4x1x128xf32, #tpu.memory_space<vmem>>, vector<1x1x128xf32>
    %47 = vector.shape_cast %46 : vector<1x1x128xf32> to vector<1x128xf32>
    %cst_29 = arith.constant dense<0.000000e+00> : vector<8xf32>
    %48 = vector.multi_reduction <add>, %43, %cst_29 [1] : vector<8x128xf32> to vector<8xf32>
    %49 = vector.shape_cast %48 : vector<8xf32> to vector<8x1xf32>
    %50 = arith.mulf %43, %43 : vector<8x128xf32>
    %cst_30 = arith.constant dense<0.000000e+00> : vector<8xf32>
    %51 = vector.multi_reduction <add>, %50, %cst_30 [1] : vector<8x128xf32> to vector<8xf32>
    %52 = vector.shape_cast %51 : vector<8xf32> to vector<8x1xf32>
    %cst_31 = arith.constant 3.125000e-02 : f32
    %53 = vector.broadcast %cst_31 : f32 to vector<8x1xf32>
    %54 = arith.mulf %49, %53 : vector<8x1xf32>
    %cst_32 = arith.constant 3.125000e-02 : f32
    %55 = vector.broadcast %cst_32 : f32 to vector<8x1xf32>
    %56 = arith.mulf %52, %55 : vector<8x1xf32>
    %57 = arith.mulf %54, %54 : vector<8x1xf32>
    %58 = arith.subf %56, %57 : vector<8x1xf32>
    %cst_33 = arith.constant 9.99999974E-6 : f32
    %59 = vector.broadcast %cst_33 : f32 to vector<8x1xf32>
    %60 = arith.addf %58, %59 : vector<8x1xf32>
    %61 = math.rsqrt %60 : vector<8x1xf32>
    %62 = vector.broadcast %61 : vector<8x1xf32> to vector<8x128xf32>
    %63 = vector.broadcast %45 : vector<1x128xf32> to vector<8x128xf32>
    %64 = arith.mulf %62, %63 : vector<8x128xf32>
    %65 = arith.mulf %43, %64 : vector<8x128xf32>
    %66 = vector.broadcast %54 : vector<8x1xf32> to vector<8x128xf32>
    %67 = arith.mulf %66, %64 : vector<8x128xf32>
    %68 = vector.broadcast %47 : vector<1x128xf32> to vector<8x128xf32>
    %69 = arith.subf %68, %67 : vector<8x128xf32>
    %70 = arith.addf %65, %69 : vector<8x128xf32>
    %71 = arith.truncf %70 : vector<8x128xf32> to vector<8x128xbf16>
    %c1 = arith.constant 1 : index
    %c0_34 = arith.constant 0 : index
    %c0_35 = arith.constant 0 : index
    %72 = vector.load %arg6[%c1, %c0_34, %c0_35] : memref<4x128x128xbf16, #tpu.memory_space<vmem>>, vector<1x128x128xbf16>
    %73 = vector.shape_cast %72 : vector<1x128x128xbf16> to vector<128x128xbf16>
    %cst_36 = arith.constant dense<0.000000e+00> : vector<8x128xf32>
    %74 = tpu.matmul %71, %73, %cst_36 {dimension_numbers = #tpu.dot_dimension_numbers<[1], [0], [0], [1], [0, 0, 1, 1], [], []>} : vector<8x128xbf16>, vector<128x128xbf16>, vector<8x128xf32> -> vector<8x128xf32>
    %c1_37 = arith.constant 1 : index
    %c0_38 = arith.constant 0 : index
    %c0_39 = arith.constant 0 : index
    %75 = vector.load %arg7[%c1_37, %c0_38, %c0_39] : memref<4x1x128xf32, #tpu.memory_space<vmem>>, vector<1x1x128xf32>
    %76 = vector.shape_cast %75 : vector<1x1x128xf32> to vector<1x128xf32>
    %77 = vector.broadcast %76 : vector<1x128xf32> to vector<8x128xf32>
    %78 = arith.addf %74, %77 : vector<8x128xf32>
    %cst_40 = arith.constant 0.000000e+00 : f32
    %79 = vector.broadcast %cst_40 : f32 to vector<8x128xf32>
    %80 = arith.maximumf %78, %79 : vector<8x128xf32>
    %c1_41 = arith.constant 1 : index
    %c0_42 = arith.constant 0 : index
    %c0_43 = arith.constant 0 : index
    %81 = vector.load %arg8[%c1_41, %c0_42, %c0_43] : memref<4x1x128xf32, #tpu.memory_space<vmem>>, vector<1x1x128xf32>
    %82 = vector.shape_cast %81 : vector<1x1x128xf32> to vector<1x128xf32>
    %c1_44 = arith.constant 1 : index
    %c0_45 = arith.constant 0 : index
    %c0_46 = arith.constant 0 : index
    %83 = vector.load %arg9[%c1_44, %c0_45, %c0_46] : memref<4x1x128xf32, #tpu.memory_space<vmem>>, vector<1x1x128xf32>
    %84 = vector.shape_cast %83 : vector<1x1x128xf32> to vector<1x128xf32>
    %cst_47 = arith.constant dense<0.000000e+00> : vector<8xf32>
    %85 = vector.multi_reduction <add>, %80, %cst_47 [1] : vector<8x128xf32> to vector<8xf32>
    %86 = vector.shape_cast %85 : vector<8xf32> to vector<8x1xf32>
    %87 = arith.mulf %80, %80 : vector<8x128xf32>
    %cst_48 = arith.constant dense<0.000000e+00> : vector<8xf32>
    %88 = vector.multi_reduction <add>, %87, %cst_48 [1] : vector<8x128xf32> to vector<8xf32>
    %89 = vector.shape_cast %88 : vector<8xf32> to vector<8x1xf32>
    %cst_49 = arith.constant 3.125000e-02 : f32
    %90 = vector.broadcast %cst_49 : f32 to vector<8x1xf32>
    %91 = arith.mulf %86, %90 : vector<8x1xf32>
    %cst_50 = arith.constant 3.125000e-02 : f32
    %92 = vector.broadcast %cst_50 : f32 to vector<8x1xf32>
    %93 = arith.mulf %89, %92 : vector<8x1xf32>
    %94 = arith.mulf %91, %91 : vector<8x1xf32>
    %95 = arith.subf %93, %94 : vector<8x1xf32>
    %cst_51 = arith.constant 9.99999974E-6 : f32
    %96 = vector.broadcast %cst_51 : f32 to vector<8x1xf32>
    %97 = arith.addf %95, %96 : vector<8x1xf32>
    %98 = math.rsqrt %97 : vector<8x1xf32>
    %99 = vector.broadcast %98 : vector<8x1xf32> to vector<8x128xf32>
    %100 = vector.broadcast %82 : vector<1x128xf32> to vector<8x128xf32>
    %101 = arith.mulf %99, %100 : vector<8x128xf32>
    %102 = arith.mulf %80, %101 : vector<8x128xf32>
    %103 = vector.broadcast %91 : vector<8x1xf32> to vector<8x128xf32>
    %104 = arith.mulf %103, %101 : vector<8x128xf32>
    %105 = vector.broadcast %84 : vector<1x128xf32> to vector<8x128xf32>
    %106 = arith.subf %105, %104 : vector<8x128xf32>
    %107 = arith.addf %102, %106 : vector<8x128xf32>
    %108 = arith.truncf %107 : vector<8x128xf32> to vector<8x128xbf16>
    %c2 = arith.constant 2 : index
    %c0_52 = arith.constant 0 : index
    %c0_53 = arith.constant 0 : index
    %109 = vector.load %arg6[%c2, %c0_52, %c0_53] : memref<4x128x128xbf16, #tpu.memory_space<vmem>>, vector<1x128x128xbf16>
    %110 = vector.shape_cast %109 : vector<1x128x128xbf16> to vector<128x128xbf16>
    %cst_54 = arith.constant dense<0.000000e+00> : vector<8x128xf32>
    %111 = tpu.matmul %108, %110, %cst_54 {dimension_numbers = #tpu.dot_dimension_numbers<[1], [0], [0], [1], [0, 0, 1, 1], [], []>} : vector<8x128xbf16>, vector<128x128xbf16>, vector<8x128xf32> -> vector<8x128xf32>
    %c2_55 = arith.constant 2 : index
    %c0_56 = arith.constant 0 : index
    %c0_57 = arith.constant 0 : index
    %112 = vector.load %arg7[%c2_55, %c0_56, %c0_57] : memref<4x1x128xf32, #tpu.memory_space<vmem>>, vector<1x1x128xf32>
    %113 = vector.shape_cast %112 : vector<1x1x128xf32> to vector<1x128xf32>
    %114 = vector.broadcast %113 : vector<1x128xf32> to vector<8x128xf32>
    %115 = arith.addf %111, %114 : vector<8x128xf32>
    %cst_58 = arith.constant 0.000000e+00 : f32
    %116 = vector.broadcast %cst_58 : f32 to vector<8x128xf32>
    %117 = arith.maximumf %115, %116 : vector<8x128xf32>
    %c2_59 = arith.constant 2 : index
    %c0_60 = arith.constant 0 : index
    %c0_61 = arith.constant 0 : index
    %118 = vector.load %arg8[%c2_59, %c0_60, %c0_61] : memref<4x1x128xf32, #tpu.memory_space<vmem>>, vector<1x1x128xf32>
    %119 = vector.shape_cast %118 : vector<1x1x128xf32> to vector<1x128xf32>
    %c2_62 = arith.constant 2 : index
    %c0_63 = arith.constant 0 : index
    %c0_64 = arith.constant 0 : index
    %120 = vector.load %arg9[%c2_62, %c0_63, %c0_64] : memref<4x1x128xf32, #tpu.memory_space<vmem>>, vector<1x1x128xf32>
    %121 = vector.shape_cast %120 : vector<1x1x128xf32> to vector<1x128xf32>
    %cst_65 = arith.constant dense<0.000000e+00> : vector<8xf32>
    %122 = vector.multi_reduction <add>, %117, %cst_65 [1] : vector<8x128xf32> to vector<8xf32>
    %123 = vector.shape_cast %122 : vector<8xf32> to vector<8x1xf32>
    %124 = arith.mulf %117, %117 : vector<8x128xf32>
    %cst_66 = arith.constant dense<0.000000e+00> : vector<8xf32>
    %125 = vector.multi_reduction <add>, %124, %cst_66 [1] : vector<8x128xf32> to vector<8xf32>
    %126 = vector.shape_cast %125 : vector<8xf32> to vector<8x1xf32>
    %cst_67 = arith.constant 3.125000e-02 : f32
    %127 = vector.broadcast %cst_67 : f32 to vector<8x1xf32>
    %128 = arith.mulf %123, %127 : vector<8x1xf32>
    %cst_68 = arith.constant 3.125000e-02 : f32
    %129 = vector.broadcast %cst_68 : f32 to vector<8x1xf32>
    %130 = arith.mulf %126, %129 : vector<8x1xf32>
    %131 = arith.mulf %128, %128 : vector<8x1xf32>
    %132 = arith.subf %130, %131 : vector<8x1xf32>
    %cst_69 = arith.constant 9.99999974E-6 : f32
    %133 = vector.broadcast %cst_69 : f32 to vector<8x1xf32>
    %134 = arith.addf %132, %133 : vector<8x1xf32>
    %135 = math.rsqrt %134 : vector<8x1xf32>
    %136 = vector.broadcast %135 : vector<8x1xf32> to vector<8x128xf32>
    %137 = vector.broadcast %119 : vector<1x128xf32> to vector<8x128xf32>
    %138 = arith.mulf %136, %137 : vector<8x128xf32>
    %139 = arith.mulf %117, %138 : vector<8x128xf32>
    %140 = vector.broadcast %128 : vector<8x1xf32> to vector<8x128xf32>
    %141 = arith.mulf %140, %138 : vector<8x128xf32>
    %142 = vector.broadcast %121 : vector<1x128xf32> to vector<8x128xf32>
    %143 = arith.subf %142, %141 : vector<8x128xf32>
    %144 = arith.addf %139, %143 : vector<8x128xf32>
    %145 = arith.truncf %144 : vector<8x128xf32> to vector<8x128xbf16>
    %c3 = arith.constant 3 : index
    %c0_70 = arith.constant 0 : index
    %c0_71 = arith.constant 0 : index
    %146 = vector.load %arg6[%c3, %c0_70, %c0_71] : memref<4x128x128xbf16, #tpu.memory_space<vmem>>, vector<1x128x128xbf16>
    %147 = vector.shape_cast %146 : vector<1x128x128xbf16> to vector<128x128xbf16>
    %cst_72 = arith.constant dense<0.000000e+00> : vector<8x128xf32>
    %148 = tpu.matmul %145, %147, %cst_72 {dimension_numbers = #tpu.dot_dimension_numbers<[1], [0], [0], [1], [0, 0, 1, 1], [], []>} : vector<8x128xbf16>, vector<128x128xbf16>, vector<8x128xf32> -> vector<8x128xf32>
    %c3_73 = arith.constant 3 : index
    %c0_74 = arith.constant 0 : index
    %c0_75 = arith.constant 0 : index
    %149 = vector.load %arg7[%c3_73, %c0_74, %c0_75] : memref<4x1x128xf32, #tpu.memory_space<vmem>>, vector<1x1x128xf32>
    %150 = vector.shape_cast %149 : vector<1x1x128xf32> to vector<1x128xf32>
    %151 = vector.broadcast %150 : vector<1x128xf32> to vector<8x128xf32>
    %152 = arith.addf %148, %151 : vector<8x128xf32>
    %cst_76 = arith.constant 0.000000e+00 : f32
    %153 = vector.broadcast %cst_76 : f32 to vector<8x128xf32>
    %154 = arith.maximumf %152, %153 : vector<8x128xf32>
    %c3_77 = arith.constant 3 : index
    %c0_78 = arith.constant 0 : index
    %c0_79 = arith.constant 0 : index
    %155 = vector.load %arg8[%c3_77, %c0_78, %c0_79] : memref<4x1x128xf32, #tpu.memory_space<vmem>>, vector<1x1x128xf32>
    %156 = vector.shape_cast %155 : vector<1x1x128xf32> to vector<1x128xf32>
    %c3_80 = arith.constant 3 : index
    %c0_81 = arith.constant 0 : index
    %c0_82 = arith.constant 0 : index
    %157 = vector.load %arg9[%c3_80, %c0_81, %c0_82] : memref<4x1x128xf32, #tpu.memory_space<vmem>>, vector<1x1x128xf32>
    %158 = vector.shape_cast %157 : vector<1x1x128xf32> to vector<1x128xf32>
    %cst_83 = arith.constant dense<0.000000e+00> : vector<8xf32>
    %159 = vector.multi_reduction <add>, %154, %cst_83 [1] : vector<8x128xf32> to vector<8xf32>
    %160 = vector.shape_cast %159 : vector<8xf32> to vector<8x1xf32>
    %161 = arith.mulf %154, %154 : vector<8x128xf32>
    %cst_84 = arith.constant dense<0.000000e+00> : vector<8xf32>
    %162 = vector.multi_reduction <add>, %161, %cst_84 [1] : vector<8x128xf32> to vector<8xf32>
    %163 = vector.shape_cast %162 : vector<8xf32> to vector<8x1xf32>
    %cst_85 = arith.constant 3.125000e-02 : f32
    %164 = vector.broadcast %cst_85 : f32 to vector<8x1xf32>
    %165 = arith.mulf %160, %164 : vector<8x1xf32>
    %cst_86 = arith.constant 3.125000e-02 : f32
    %166 = vector.broadcast %cst_86 : f32 to vector<8x1xf32>
    %167 = arith.mulf %163, %166 : vector<8x1xf32>
    %168 = arith.mulf %165, %165 : vector<8x1xf32>
    %169 = arith.subf %167, %168 : vector<8x1xf32>
    %cst_87 = arith.constant 9.99999974E-6 : f32
    %170 = vector.broadcast %cst_87 : f32 to vector<8x1xf32>
    %171 = arith.addf %169, %170 : vector<8x1xf32>
    %172 = math.rsqrt %171 : vector<8x1xf32>
    %173 = vector.broadcast %172 : vector<8x1xf32> to vector<8x128xf32>
    %174 = vector.broadcast %156 : vector<1x128xf32> to vector<8x128xf32>
    %175 = arith.mulf %173, %174 : vector<8x128xf32>
    %176 = arith.mulf %154, %175 : vector<8x128xf32>
    %177 = vector.broadcast %165 : vector<8x1xf32> to vector<8x128xf32>
    %178 = arith.mulf %177, %175 : vector<8x128xf32>
    %179 = vector.broadcast %158 : vector<1x128xf32> to vector<8x128xf32>
    %180 = arith.subf %179, %178 : vector<8x128xf32>
    %181 = arith.addf %176, %180 : vector<8x128xf32>
    %182 = arith.truncf %181 : vector<8x128xf32> to vector<8x128xbf16>
    %c0_88 = arith.constant 0 : index
    %c0_89 = arith.constant 0 : index
    %183 = vector.load %arg10[%c0_88, %c0_89] : memref<128x128xbf16, #tpu.memory_space<vmem>>, vector<128x128xbf16>
    %cst_90 = arith.constant dense<0.000000e+00> : vector<8x128xf32>
    %184 = tpu.matmul %182, %183, %cst_90 {dimension_numbers = #tpu.dot_dimension_numbers<[1], [0], [0], [1], [0, 0, 1, 1], [], []>} : vector<8x128xbf16>, vector<128x128xbf16>, vector<8x128xf32> -> vector<8x128xf32>
    %c0_91 = arith.constant 0 : index
    %c0_92 = arith.constant 0 : index
    %185 = vector.load %arg11[%c0_91, %c0_92] : memref<1x128xf32, #tpu.memory_space<vmem>>, vector<1x128xf32>
    %186 = vector.broadcast %185 : vector<1x128xf32> to vector<8x128xf32>
    %187 = arith.addf %184, %186 : vector<8x128xf32>
    %c0_93 = arith.constant 0 : index
    %c0_94 = arith.constant 0 : index
    %188 = vector.load %arg12[%c0_93, %c0_94] : memref<8x128xf32, #tpu.memory_space<vmem>>, vector<8x128xf32>
    tpu.vector_store %arg12[%c0_93, %c0_94], %187 {strides = array<i32>} : memref<8x128xf32, #tpu.memory_space<vmem>>, vector<8x128xf32>,
    return
  }
  func.func @transform_0(%arg0: i32) -> (i32, i32) {
    %c0_i32 = arith.constant 0 : i32
    %c0_i32_0 = arith.constant 0 : i32
    return %arg0, %c0_i32 : i32, i32
  }
  func.func @transform_1(%arg0: i32) -> (i32, i32) {
    %c0_i32 = arith.constant 0 : i32
    %c0_i32_0 = arith.constant 0 : i32
    %c0_i32_1 = arith.constant 0 : i32
    return %c0_i32, %c0_i32_0 : i32, i32
  }
  func.func @transform_2(%arg0: i32) -> (i32, i32) {
    %c0_i32 = arith.constant 0 : i32
    %c0_i32_0 = arith.constant 0 : i32
    %c0_i32_1 = arith.constant 0 : i32
    return %c0_i32, %c0_i32_0 : i32, i32
  }
  func.func @transform_3(%arg0: i32) -> (i32, i32) {
    %c0_i32 = arith.constant 0 : i32
    %c0_i32_0 = arith.constant 0 : i32
    %c0_i32_1 = arith.constant 0 : i32
    return %c0_i32, %c0_i32_0 : i32, i32
  }
  func.func @transform_4(%arg0: i32) -> (i32, i32) {
    %c0_i32 = arith.constant 0 : i32
    %c0_i32_0 = arith.constant 0 : i32
    %c0_i32_1 = arith.constant 0 : i32
    return %c0_i32, %c0_i32_0 : i32, i32
  }
  func.func @transform_5(%arg0: i32) -> (i32, i32, i32) {
    %c0_i32 = arith.constant 0 : i32
    %c0_i32_0 = arith.constant 0 : i32
    %c0_i32_1 = arith.constant 0 : i32
    %c0_i32_2 = arith.constant 0 : i32
    return %c0_i32, %c0_i32_0, %c0_i32_1 : i32, i32, i32
  }
  func.func @transform_6(%arg0: i32) -> (i32, i32, i32) {
    %c0_i32 = arith.constant 0 : i32
    %c0_i32_0 = arith.constant 0 : i32
    %c0_i32_1 = arith.constant 0 : i32
    %c0_i32_2 = arith.constant 0 : i32
    return %c0_i32, %c0_i32_0, %c0_i32_1 : i32, i32, i32
  }
  func.func @transform_7(%arg0: i32) -> (i32, i32, i32) {
    %c0_i32 = arith.constant 0 : i32
    %c0_i32_0 = arith.constant 0 : i32
    %c0_i32_1 = arith.constant 0 : i32
    %c0_i32_2 = arith.constant 0 : i32
    return %c0_i32, %c0_i32_0, %c0_i32_1 : i32, i32, i32
  }
  func.func @transform_8(%arg0: i32) -> (i32, i32, i32) {
    %c0_i32 = arith.constant 0 : i32
    %c0_i32_0 = arith.constant 0 : i32
    %c0_i32_1 = arith.constant 0 : i32
    %c0_i32_2 = arith.constant 0 : i32
    return %c0_i32, %c0_i32_0, %c0_i32_1 : i32, i32, i32
  }
  func.func @transform_9(%arg0: i32) -> (i32, i32) {
    %c0_i32 = arith.constant 0 : i32
    %c0_i32_0 = arith.constant 0 : i32
    %c0_i32_1 = arith.constant 0 : i32
    return %c0_i32, %c0_i32_0 : i32, i32
  }
  func.func @transform_10(%arg0: i32) -> (i32, i32) {
    %c0_i32 = arith.constant 0 : i32
    %c0_i32_0 = arith.constant 0 : i32
    %c0_i32_1 = arith.constant 0 : i32
    return %c0_i32, %c0_i32_0 : i32, i32
  }
  func.func @transform_11(%arg0: i32) -> (i32, i32) {
    %c0_i32 = arith.constant 0 : i32
    %c0_i32_0 = arith.constant 0 : i32
    return %arg0, %c0_i32 : i32, i32
  }
}

</mosaic_0001>

<bundles_post_ra>
// kernel: tpu_custom_call.1
= control target key start
LH: loop header
LB: loop body
LE: loop exit
PB: predicated region body
PF: predicated region fallthrough
CT: control target
= control target key end

     0   :  { %16 = vsyncpa [#allocation3], 0  ;;  %s1498_s0 = inlined_call_operand.hbm [shape: f32[8,128], index: 0, kind: input, shape index: {}]   ;;  %s1499_s1 = inlined_call_operand.hbm [shape: bf16[128,128], index: 1, kind: input, shape index: {}]   ;;  %s1500_s2 = inlined_call_operand.vmem [shape: f32[1,128], index: 2, kind: input, shape index: {}]   ;;  %s1501_s3 = inlined_call_operand.hbm [shape: f32[1,128], index: 3, kind: input, shape index: {}]   ;;  %s1502_s4 = inlined_call_operand.hbm [shape: f32[1,128], index: 4, kind: input, shape index: {}]   ;;  %s1503_s5 = inlined_call_operand.hbm [shape: bf16[4,128,128], index: 5, kind: input, shape index: {}]   ;;  %s1504_s6 = inlined_call_operand.vmem [shape: f32[4,1,128], index: 6, kind: input, shape index: {}]   ;;  %s1505_s7 = inlined_call_operand.hbm [shape: f32[4,1,128], index: 7, kind: input, shape index: {}]   ;;  %s1506_s8 = inlined_call_operand.hbm [shape: f32[4,1,128], index: 8, kind: input, shape index: {}]   ;;  %s1507_s9 = inlined_call_operand.hbm [shape: bf16[128,128], index: 9, kind: input, shape index: {}]   ;;  %s1508_s10 = inlined_call_operand.vmem [shape: f32[1,128], index: 10, kind: input, shape index: {}]   ;;  %s1509_s11 = inlined_call_operand.hbm [shape: f32[8,128], index: 11, kind: output, shape index: {}]  }
   0x1   :  { %17 = vsyncpa [#allocation6], 0 }
   0x2   :  { %18 = vsyncpa [#allocation9], 0 }
   0x3   :  { %19 = vsyncpa [#allocation12], 0 }
   0x4   :  { %20 = vsyncpa [#allocation15], 0  ;;  %s37_s19 = sshll.u32 %s1499_s1, 4  ;;  %s38_s19 = int_to_ptr.hbm [resolvable:$true] %s37_s19 }
   0x5   :  { %21 = vsyncpa [#allocation4], 0  ;;  %s1365_s20 = smov [#allocation5]   ;;  %s64_s24 = sshll.u32 %s1502_s4, 4  ;;  %s65_s24 = int_to_ptr.hbm [resolvable:$true] %s64_s24 }
   0x6   :  { %s39_s21 = sshll.u32 %s1365_s20, 4  ;;  %s1366_s25 = smov 64   ;;  %s40_s21 = int_to_ptr.vmem [resolvable:$true] %s39_s21 }
   0x7   :  { %s1367_s26 = smov 4   ;;  %s1368_s27 = smov [#allocation8]  }
   0x8   :  { %45 = dma.hbm_to_vmem [thread:$0]  %s38_s19, 1024, %s40_s21, [#allocation6], %s1366_s25, %s1366_s25, %s1367_s26  }
   0x9   :  { %s66_s28 = sshll.u32 %s1368_s27, 4  ;;  %s89_s30 = sshll.u32 %s1505_s7, 4  ;;  %s67_s28 = int_to_ptr.vmem [resolvable:$true] %s66_s28  ;;  %s90_s30 = int_to_ptr.hbm [resolvable:$true] %s89_s30 }
   0xa   :  { %69 = dma.hbm_to_vmem [thread:$0]  %s65_s24, 16, %s67_s28, [#allocation9]  }
   0xb   :  { %s1369_s12 = smov [#allocation11]   ;;  %s27_s15 = sshll.u32 %s1498_s0, 4  ;;  %s28_s15 = int_to_ptr.hbm [resolvable:$true] %s27_s15 }
   0xc   :  { %s91_s13 = sshll.u32 %s1369_s12, 4  ;;  %s1370_s16 = smov 16   ;;  %s92_s13 = int_to_ptr.vmem [resolvable:$true] %s91_s13 }
   0xd   :  { %s1371_s17 = smov 1   ;;  %s1372_s18 = smov [#allocation2]  }
   0xe   :  { %97 = dma.hbm_to_vmem [thread:$0]  %s90_s30, 64, %s92_s13, [#allocation12], %s1370_s16, %s1370_s16, %s1371_s17  }
   0xf   :  { %s29_s19 = sshll.u32 %s1372_s18, 4  ;;  %s53_s21 = sshll.u32 %s1501_s3, 4  ;;  %s30_s19 = int_to_ptr.vmem [resolvable:$true] %s29_s19  ;;  %s54_s21 = int_to_ptr.hbm [resolvable:$true] %s53_s21 }
  0x10   :  { %32 = dma.hbm_to_vmem [thread:$0]  %s28_s15, 128, %s30_s19, [#allocation3]  }
  0x11   :  { %s74_s0 = sshll.u32 %s1503_s5, 4  ;;  %s1373_s24 = smov [#allocation7]   ;;  %s75_s0 = int_to_ptr.hbm [resolvable:$true] %s74_s0 }
  0x12   :  { %s55_s27 = sshll.u32 %s1373_s24, 4  ;;  %s1374_s28 = smov [#allocation10]   ;;  %s56_s27 = int_to_ptr.vmem [resolvable:$true] %s55_s27 }
  0x13   :  { %58 = dma.hbm_to_vmem [thread:$0]  %s54_s21, 16, %s56_s27, [#allocation6]  }
  0x14   :  { %s76_s29 = sshll.u32 %s1374_s28, 4  ;;  %s102_s12 = sshll.u32 %s1506_s8, 4  ;;  %s77_s29 = int_to_ptr.vmem [resolvable:$true] %s76_s29  ;;  %s103_s12 = int_to_ptr.hbm [resolvable:$true] %s102_s12 }
  0x15   :  { %82 = dma.hbm_to_vmem [thread:$0]  %s75_s0, 4096, %s77_s29, [#allocation9], %s1366_s25, %s1366_s25, %s1367_s26  }
  0x16   :  { %s115_s5 = sshll.u32 %s1507_s9, 4  ;;  %s1375_s4 = smov [#allocation13]   ;;  %s116_s5 = int_to_ptr.hbm [resolvable:$true] %s115_s5 }
  0x17   :  { %s104_s14 = sshll.u32 %s1375_s4, 4  ;;  %s1376_s15 = smov [#allocation14]   ;;  %s105_s14 = int_to_ptr.vmem [resolvable:$true] %s104_s14 }
  0x18   :  { %110 = dma.hbm_to_vmem [thread:$0]  %s103_s12, 64, %s105_s14, [#allocation12], %s1370_s16, %s1370_s16, %s1371_s17  }
  0x19   :  { %s117_s8 = sshll.u32 %s1376_s15, 4  ;;  %s118_s8 = int_to_ptr.vmem [resolvable:$true] %s117_s8 }
  0x1a   :  { %123 = dma.hbm_to_vmem [thread:$0]  %s116_s5, 1024, %s118_s8, [#allocation15], %s1366_s25, %s1366_s25, %s1367_s26  }
  0x1b   :  { %1353 = dma.done.wait [#allocation3], 128  }
  0x1c   :  { %1354 = vsyncadd [#allocation3], 4294967168 }
  0x1d   :  { %1355 = dma.done.wait [#allocation6], 1040  }
  0x1e   :  { %1356 = vsyncadd [#allocation6], 4294966256 }
  0x1f   :  { %1357 = dma.done.wait [#allocation9], 4112  }
  0x20   :  { %1358 = vsyncadd [#allocation9], 4294963184 }
  0x21   :  { %1359 = dma.done.wait [#allocation12], 128  }
  0x22   :  { %1360 = vsyncadd [#allocation12], 4294967168 }
  0x23   :  { %1361 = dma.done.wait [#allocation15], 1024  }
  0x24   :  { %1362 = vsyncadd [#allocation15], 4294966272  ;;  %v1057_v0 = vld [vmem:[#allocation5 + $0x38] sm:$0xff]  ;;  %v1056_v1 = vld [vmem:[#allocation5 + $0x30] sm:$0xff]  ;;  %s1377_s22 = smov [#allocation16]   ;;  %s841_s27 = sshll.u32 %s1509_s11, 4  ;;  %s842_s27 = int_to_ptr.hbm [resolvable:$true] %s841_s27 }
  0x25   :  { %228 = vmatpush.bf16.msra.mxu0 %v1057_v0  ;;  %v1055_v2 = vld [vmem:[#allocation5 + $0x28] sm:$0xff]  ;;  %v1054_v3 = vld [vmem:[#allocation5 + $0x20] sm:$0xff]  ;;  %v1053_v4 = vld [vmem:[#allocation5 + $0x18] sm:$0xff]  ;;  %s839_s23 = sshll.u32 %s1377_s22, 4  ;;  %s840_s23 = int_to_ptr.vmem [resolvable:$true] %s839_s23 }
  0x26   :  { %v1052_v5 = vld [vmem:[#allocation5 + $0x10] sm:$0xff]  ;;  %v1051_v6 = vld [vmem:[#allocation5 + $0x8] sm:$0xff]  ;;  %v1050_v7 = vld [vmem:[#allocation5] sm:$0xff] }
  0x27   :  { %v158_v8 = vld [vmem:[#allocation2] sm:$0xff]  ;;  %v1063_v18 = vld [vmem:[#allocation10 + $0x28] sm:$0xff]  ;;  %v1062_v19 = vld [vmem:[#allocation10 + $0x20] sm:$0xff] }
  0x28   :  { %v159_v9 = vpack.c.bf16 %v158_v8, %v158_v8  ;;  %v1111_v10 = vld [vmem:[%s1500_s2] ss:$0 sm:$0xff]  ;;  %v1065_v16 = vld [vmem:[#allocation10 + $0x38] sm:$0xff]  ;;  %v1059_v23 = vld [vmem:[#allocation10 + $0x8] sm:$0xff] }
  0x29   :  { %229 = vmatpush.bf16.msra.mxu0 %v1056_v1  ;;  %344 = vmatpush.bf16.msra.mxu1 %v1065_v16  ;;  %v1064_v17 = vld [vmem:[#allocation10 + $0x30] sm:$0xff]  ;;  %v1061_v20 = vld [vmem:[#allocation10 + $0x18] sm:$0xff]  ;;  %v1058_v24 = vld [vmem:[#allocation10] sm:$0xff] }
  0x2a   :  { %v1060_v21 = vld [vmem:[#allocation10 + $0x10] sm:$0xff]  ;;  %v1112_v36 = vld [vmem:[#allocation7] ss:$0 sm:$0xff]  ;;  %v1113_v40 = vld [vmem:[#allocation8] ss:$0 sm:$0xff] }
  0x2b   :  { %v1114_v46 = vld [vmem:[%s1504_s6] ss:$0 sm:$0xff]  ;;  %v1073_v52 = vld [vmem:[#allocation10 + $0x78] sm:$0xff]  ;;  %v1071_v54 = vld [vmem:[#allocation10 + $0x68] sm:$0xff] }
  0x2c   :  { %462 = vmatpush.bf16.msra.mxu2 %v1073_v52  ;;  %v1072_v53 = vld [vmem:[#allocation10 + $0x70] sm:$0xff]  ;;  %v1070_v55 = vld [vmem:[#allocation10 + $0x60] sm:$0xff]  ;;  %v1069_v56 = vld [vmem:[#allocation10 + $0x58] sm:$0xff] }
  0x2d   :  { %230 = vmatpush.bf16.msra.mxu0 %v1055_v2  ;;  %345 = vmatpush.bf16.msra.mxu1 %v1064_v17  ;;  %v1068_v57 = vld [vmem:[#allocation10 + $0x50] sm:$0xff]  ;;  %v1067_v59 = vld [vmem:[#allocation10 + $0x48] sm:$0xff]  ;;  %v1066_v60 = vld [vmem:[#allocation10 + $0x40] sm:$0xff] }
  0x2e   :  { %v1115_v8 = vld [vmem:[#allocation11] ss:$0 sm:$0xff] }
  0x30   :  { %463 = vmatpush.bf16.msra.mxu2 %v1072_v53 }
  0x31   :  { %231 = vmatpush.bf16.msra.mxu0 %v1054_v3  ;;  %346 = vmatpush.bf16.msra.mxu1 %v1063_v18  ;;  %v1117_v18 = vld [vmem:[%s1504_s6 + $0x1] ss:$0 sm:$0xff] }
  0x34   :  { %464 = vmatpush.bf16.msra.mxu2 %v1071_v54  ;;  %v1120_v54 = vld [vmem:[%s1504_s6 + $0x2] ss:$0 sm:$0xff] }
  0x35   :  { %232 = vmatpush.bf16.msra.mxu0 %v1053_v4  ;;  %347 = vmatpush.bf16.msra.mxu1 %v1062_v19 }
  0x38   :  { %465 = vmatpush.bf16.msra.mxu2 %v1070_v55 }
  0x39   :  { %233 = vmatpush.bf16.msra.mxu0 %v1052_v5  ;;  %348 = vmatpush.bf16.msra.mxu1 %v1061_v20 }
  0x3c   :  { %466 = vmatpush.bf16.msra.mxu2 %v1069_v56 }
  0x3d   :  { %234 = vmatpush.bf16.msra.mxu0 %v1051_v6  ;;  %349 = vmatpush.bf16.msra.mxu1 %v1060_v21 }
  0x40   :  { %467 = vmatpush.bf16.msra.mxu2 %v1068_v57 }
  0x41   :  { %235 = vmatpush.bf16.msra.mxu0 %v1050_v7  ;;  %350 = vmatpush.bf16.msra.mxu1 %v1059_v23 }
  0x44   :  { %236 = vmatmul.bf16.vlgmr.msra.gmra.mxu0 %v159_v9  ;;  %468 = vmatpush.bf16.msra.mxu2 %v1067_v59 }
  0x45   :  { %351 = vmatpush.bf16.msra.mxu1 %v1058_v24  ;;  %v1081_v24 = vld [vmem:[#allocation10 + $0xb8] sm:$0xff] }
  0x46   :  { %582 = vmatpush.bf16.msra.mxu3 %v1081_v24 }
  0x48   :  { %469 = vmatpush.bf16.msra.mxu2 %v1066_v60  ;;  %v1089_v60 = vld [vmem:[#allocation10 + $0xf8] sm:$0xff] }
  0x49   :  { %702 = vmatpush.bf16.msrb.mxu0 %v1089_v60 }
  0xc1   :  { %v237_v11 = vpop.f32.mrf.mxu0 }
  0xc2   :  { %v238_v12 = vadd.f32 %v1111_v10, %v237_v11 }
  0xc4   :  { %v241_v13 = vmax.f32 %v238_v12, 0.0  ;;  %v1116_v12 = vld [vmem:[#allocation13] ss:$0 sm:$0xff] }
  0xc6   :  { %244 = vadd.xlane.f32.xlu0 %v241_v13  ;;  %v246_v15 = vmul.f32 %v241_v13, %v241_v13 }
  0xc9   :  { %v239_v14 = vpop.f32.mrf.mxu0 }
  0xce   :  { %247 = vadd.xlane.f32.xlu0 %v246_v15 }
 0x139   :  { %v245_v22 = vpop.xlane.xlu0 %244 }
 0x13a   :  { %v249_v25 = vmul.f32 0.03125, %v245_v22 }
 0x13c   :  { %v251_v27 = vmul.f32 %v249_v25, %v249_v25 }
 0x141   :  { %v248_v26 = vpop.xlane.xlu0 %247 }
 0x142   :  { %v250_v28 = vmul.f32 0.03125, %v248_v26  ;;  %v1079_v26 = vld [vmem:[#allocation10 + $0xa8] sm:$0xff] }
 0x144   :  { %v252_v29 = vsub.f32 %v250_v28, %v251_v27  ;;  %v1078_v27 = vld [vmem:[#allocation10 + $0xa0] sm:$0xff]  ;;  %v1077_v28 = vld [vmem:[#allocation10 + $0x98] sm:$0xff] }
 0x146   :  { %v253_v30 = vadd.f32 1e-05, %v252_v29  ;;  %v1076_v29 = vld [vmem:[#allocation10 + $0x90] sm:$0xff] }
 0x148   :  { %1127 = vrsqrt.f32 %v253_v30  ;;  %vm260_vm1 = vweird.f32 %v253_v30 }
 0x14e   :  { %v1128_v31 = vpop.eup %1127 }
 0x14f   :  { %v255_v32 = vmul.f32 %v1128_v31, %v253_v30  ;;  %vm261_vm0 = vweird.f32 %v1128_v31 }
 0x150   :  { %vm262_vm2 = vmor %vm260_vm1, %vm261_vm0 }
 0x151   :  { %v256_v33 = vmul.f32 %v1128_v31, %v255_v32  ;;  %v1074_v32 = vld [vmem:[#allocation10 + $0x80] sm:$0xff] }
 0x153   :  { %v257_v34 = vmul.f32 0.5, %v256_v33 }
 0x155   :  { %v258_v35 = vsub.f32 1.5, %v257_v34 }
 0x157   :  { %v259_v37 = vmul.f32 %v1128_v31, %v258_v35 }
 0x159   :  { %v263_v38 = vsel %vm262_vm2, %v1128_v31, %v259_v37  ;;  %v1075_v31 = vld [vmem:[#allocation10 + $0x88] sm:$0xff] }
 0x15a   :  { %v267_v39 = vmul.f32 %v1112_v36, %v263_v38 }
 0x15c   :  { %v269_v41 = vmul.f32 %v267_v39, %v249_v25  ;;  %v268_v42 = vmul.f32 %v267_v39, %v241_v13  ;;  %v1080_v25 = vld [vmem:[#allocation10 + $0xb0] sm:$0xff] }
 0x15d   :  { %583 = vmatpush.bf16.msra.mxu3 %v1080_v25 }
 0x15e   :  { %v273_v43 = vsub.f32 %v1113_v40, %v269_v41 }
 0x160   :  { %v274_v44 = vadd.f32 %v273_v43, %v268_v42 }
 0x161   :  { %584 = vmatpush.bf16.msra.mxu3 %v1079_v26  ;;  %v1123_v26 = vld [vmem:[%s1504_s6 + $0x3] ss:$0 sm:$0xff] }
 0x162   :  { %v275_v45 = vpack.c.bf16 %v274_v44, %v274_v44  ;;  %v1118_v44 = vld [vmem:[#allocation11 + $0x1] ss:$0 sm:$0xff] }
 0x164   :  { %352 = vmatmul.bf16.vlgmr.msra.gmra.mxu1 %v275_v45 }
 0x165   :  { %585 = vmatpush.bf16.msra.mxu3 %v1078_v27 }
 0x169   :  { %586 = vmatpush.bf16.msra.mxu3 %v1077_v28 }
 0x16d   :  { %587 = vmatpush.bf16.msra.mxu3 %v1076_v29 }
 0x171   :  { %588 = vmatpush.bf16.msra.mxu3 %v1075_v31 }
 0x175   :  { %589 = vmatpush.bf16.msra.mxu3 %v1074_v32  ;;  %v1097_v32 = vld [vmem:[#allocation14 + $0x38] sm:$0xff] }
 0x176   :  { %820 = vmatpush.bf16.msrb.mxu1 %v1097_v32 }
 0x1e1   :  { %v353_v47 = vpop.f32.mrf.mxu1 }
 0x1e2   :  { %v354_v48 = vadd.f32 %v1114_v46, %v353_v47 }
 0x1e4   :  { %v357_v49 = vmax.f32 %v354_v48, 0.0  ;;  %v1119_v48 = vld [vmem:[#allocation13 + $0x1] ss:$0 sm:$0xff] }
 0x1e6   :  { %360 = vadd.xlane.f32.xlu1 %v357_v49  ;;  %v362_v51 = vmul.f32 %v357_v49, %v357_v49 }
 0x1e9   :  { %v355_v50 = vpop.f32.mrf.mxu1 }
 0x1ee   :  { %363 = vadd.xlane.f32.xlu1 %v362_v51 }
 0x259   :  { %v361_v58 = vpop.xlane.xlu1 %360 }
 0x25a   :  { %v365_v61 = vmul.f32 0.03125, %v361_v58 }
 0x25c   :  { %v367_v63 = vmul.f32 %v365_v61, %v365_v61 }
 0x261   :  { %v364_v62 = vpop.xlane.xlu1 %363 }
 0x262   :  { %v366_v0 = vmul.f32 0.03125, %v364_v62  ;;  %v1087_v62 = vld [vmem:[#allocation10 + $0xe8] sm:$0xff] }
 0x264   :  { %v368_v1 = vsub.f32 %v366_v0, %v367_v63  ;;  %v1086_v63 = vld [vmem:[#allocation10 + $0xe0] sm:$0xff]  ;;  %v1085_v0 = vld [vmem:[#allocation10 + $0xd8] sm:$0xff] }
 0x266   :  { %v369_v2 = vadd.f32 1e-05, %v368_v1  ;;  %v1084_v1 = vld [vmem:[#allocation10 + $0xd0] sm:$0xff] }
 0x268   :  { %1129 = vrsqrt.f32 %v369_v2  ;;  %vm376_vm4 = vweird.f32 %v369_v2 }
 0x26e   :  { %v1130_v3 = vpop.eup %1129 }
 0x26f   :  { %v371_v4 = vmul.f32 %v1130_v3, %v369_v2  ;;  %vm377_vm3 = vweird.f32 %v1130_v3  ;;  %v1083_v2 = vld [vmem:[#allocation10 + $0xc8] sm:$0xff] }
 0x270   :  { %vm378_vm5 = vmor %vm376_vm4, %vm377_vm3 }
 0x271   :  { %v372_v5 = vmul.f32 %v1130_v3, %v371_v4 }
 0x273   :  { %v373_v6 = vmul.f32 0.5, %v372_v5 }
 0x275   :  { %v374_v7 = vsub.f32 1.5, %v373_v6 }
 0x277   :  { %v375_v9 = vmul.f32 %v1130_v3, %v374_v7 }
 0x279   :  { %v379_v10 = vsel %vm378_vm5, %v1130_v3, %v375_v9  ;;  %v1082_v3 = vld [vmem:[#allocation10 + $0xc0] sm:$0xff] }
 0x27a   :  { %v383_v11 = vmul.f32 %v1115_v8, %v379_v10 }
 0x27c   :  { %v385_v13 = vmul.f32 %v383_v11, %v365_v61  ;;  %v384_v14 = vmul.f32 %v383_v11, %v357_v49  ;;  %v1088_v61 = vld [vmem:[#allocation10 + $0xf0] sm:$0xff] }
 0x27d   :  { %703 = vmatpush.bf16.msrb.mxu0 %v1088_v61 }
 0x27e   :  { %v389_v15 = vsub.f32 %v1116_v12, %v385_v13 }
 0x280   :  { %v390_v16 = vadd.f32 %v389_v15, %v384_v14 }
 0x281   :  { %704 = vmatpush.bf16.msrb.mxu0 %v1087_v62  ;;  %v1126_v62 = vld [vmem:[%s1508_s10] ss:$0 sm:$0xff] }
 0x282   :  { %v391_v17 = vpack.c.bf16 %v390_v16, %v390_v16  ;;  %v1121_v16 = vld [vmem:[#allocation11 + $0x2] ss:$0 sm:$0xff] }
 0x284   :  { %470 = vmatmul.bf16.vlgmr.msra.gmra.mxu2 %v391_v17 }
 0x285   :  { %705 = vmatpush.bf16.msrb.mxu0 %v1086_v63 }
 0x289   :  { %706 = vmatpush.bf16.msrb.mxu0 %v1085_v0 }
 0x28d   :  { %707 = vmatpush.bf16.msrb.mxu0 %v1084_v1 }
 0x291   :  { %708 = vmatpush.bf16.msrb.mxu0 %v1083_v2 }
 0x295   :  { %709 = vmatpush.bf16.msrb.mxu0 %v1082_v3 }
 0x307   :  { %v471_v19 = vpop.f32.mrf.mxu2 }
 0x308   :  { %v472_v20 = vadd.f32 %v1117_v18, %v471_v19 }
 0x30a   :  { %v475_v21 = vmax.f32 %v472_v20, 0.0  ;;  %v1122_v20 = vld [vmem:[#allocation13 + $0x2] ss:$0 sm:$0xff] }
 0x30c   :  { %480 = vadd.xlane.f32.xlu2 %v475_v21  ;;  %v482_v23 = vmul.f32 %v475_v21, %v475_v21 }
 0x30f   :  { %v473_v22 = vpop.f32.mrf.mxu2 }
 0x314   :  { %483 = vadd.xlane.f32.xlu2 %v482_v23 }
 0x37f   :  { %v481_v30 = vpop.xlane.xlu2 %480 }
 0x380   :  { %v485_v33 = vmul.f32 0.03125, %v481_v30 }
 0x382   :  { %v487_v35 = vmul.f32 %v485_v33, %v485_v33 }
 0x387   :  { %v484_v34 = vpop.xlane.xlu2 %483 }
 0x388   :  { %v486_v36 = vmul.f32 0.03125, %v484_v34  ;;  %v1095_v34 = vld [vmem:[#allocation14 + $0x28] sm:$0xff] }
 0x38a   :  { %v488_v37 = vsub.f32 %v486_v36, %v487_v35  ;;  %v1094_v35 = vld [vmem:[#allocation14 + $0x20] sm:$0xff]  ;;  %v1093_v36 = vld [vmem:[#allocation14 + $0x18] sm:$0xff] }
 0x38c   :  { %v489_v38 = vadd.f32 1e-05, %v488_v37  ;;  %v1092_v37 = vld [vmem:[#allocation14 + $0x10] sm:$0xff] }
 0x38e   :  { %1131 = vrsqrt.f32 %v489_v38  ;;  %vm496_vm7 = vweird.f32 %v489_v38 }
 0x394   :  { %v1132_v39 = vpop.eup %1131 }
 0x395   :  { %v491_v40 = vmul.f32 %v1132_v39, %v489_v38  ;;  %vm497_vm6 = vweird.f32 %v1132_v39  ;;  %v1091_v38 = vld [vmem:[#allocation14 + $0x8] sm:$0xff] }
 0x396   :  { %vm498_vm8 = vmor %vm496_vm7, %vm497_vm6 }
 0x397   :  { %v492_v41 = vmul.f32 %v1132_v39, %v491_v40 }
 0x399   :  { %v493_v42 = vmul.f32 0.5, %v492_v41 }
 0x39b   :  { %v494_v43 = vsub.f32 1.5, %v493_v42 }
 0x39d   :  { %v495_v45 = vmul.f32 %v1132_v39, %v494_v43 }
 0x39f   :  { %v499_v46 = vsel %vm498_vm8, %v1132_v39, %v495_v45  ;;  %v1090_v39 = vld [vmem:[#allocation14] sm:$0xff] }
 0x3a0   :  { %v503_v47 = vmul.f32 %v1118_v44, %v499_v46 }
 0x3a2   :  { %v505_v49 = vmul.f32 %v503_v47, %v485_v33  ;;  %v504_v50 = vmul.f32 %v503_v47, %v475_v21  ;;  %v1096_v33 = vld [vmem:[#allocation14 + $0x30] sm:$0xff] }
 0x3a3   :  { %821 = vmatpush.bf16.msrb.mxu1 %v1096_v33 }
 0x3a4   :  { %v509_v51 = vsub.f32 %v1119_v48, %v505_v49 }
 0x3a6   :  { %v510_v52 = vadd.f32 %v509_v51, %v504_v50 }
 0x3a7   :  { %822 = vmatpush.bf16.msrb.mxu1 %v1095_v34 }
 0x3a8   :  { %v511_v53 = vpack.c.bf16 %v510_v52, %v510_v52  ;;  %v1124_v52 = vld [vmem:[#allocation11 + $0x3] ss:$0 sm:$0xff] }
 0x3aa   :  { %590 = vmatmul.bf16.vlgmr.msra.gmra.mxu3 %v511_v53 }
 0x3ab   :  { %823 = vmatpush.bf16.msrb.mxu1 %v1094_v35 }
 0x3af   :  { %824 = vmatpush.bf16.msrb.mxu1 %v1093_v36 }
 0x3b3   :  { %825 = vmatpush.bf16.msrb.mxu1 %v1092_v37 }
 0x3b7   :  { %826 = vmatpush.bf16.msrb.mxu1 %v1091_v38 }
 0x3bb   :  { %827 = vmatpush.bf16.msrb.mxu1 %v1090_v39 }
 0x42d   :  { %v591_v55 = vpop.f32.mrf.mxu3 }
 0x42e   :  { %v592_v56 = vadd.f32 %v1120_v54, %v591_v55 }
 0x430   :  { %v595_v57 = vmax.f32 %v592_v56, 0.0  ;;  %v1125_v56 = vld [vmem:[#allocation13 + $0x3] ss:$0 sm:$0xff] }
 0x432   :  { %600 = vadd.xlane.f32.xlu0 %v595_v57  ;;  %v602_v58 = vmul.f32 %v595_v57, %v595_v57 }
 0x434   :  { %603 = vadd.xlane.f32.xlu1 %v602_v58 }
 0x435   :  { %v593_v59 = vpop.f32.mrf.mxu3 }
 0x4a5   :  { %v601_v4 = vpop.xlane.xlu0 %600 }
 0x4a6   :  { %v605_v5 = vmul.f32 0.03125, %v601_v4 }
 0x4a7   :  { %v604_v6 = vpop.xlane.xlu1 %603 }
 0x4a8   :  { %v607_v7 = vmul.f32 %v605_v5, %v605_v5  ;;  %v606_v8 = vmul.f32 0.03125, %v604_v6 }
 0x4aa   :  { %v608_v9 = vsub.f32 %v606_v8, %v607_v7 }
 0x4ac   :  { %v609_v10 = vadd.f32 1e-05, %v608_v9 }
 0x4ae   :  { %1133 = vrsqrt.f32 %v609_v10  ;;  %vm616_vm10 = vweird.f32 %v609_v10 }
 0x4b4   :  { %v1134_v11 = vpop.eup %1133 }
 0x4b5   :  { %v611_v12 = vmul.f32 %v1134_v11, %v609_v10  ;;  %vm617_vm9 = vweird.f32 %v1134_v11 }
 0x4b6   :  { %vm618_vm11 = vmor %vm616_vm10, %vm617_vm9 }
 0x4b7   :  { %v612_v13 = vmul.f32 %v1134_v11, %v611_v12 }
 0x4b9   :  { %v613_v14 = vmul.f32 0.5, %v612_v13 }
 0x4bb   :  { %v614_v15 = vsub.f32 1.5, %v613_v14 }
 0x4bd   :  { %v615_v17 = vmul.f32 %v1134_v11, %v614_v15 }
 0x4bf   :  { %v619_v18 = vsel %vm618_vm11, %v1134_v11, %v615_v17 }
 0x4c0   :  { %v623_v19 = vmul.f32 %v1121_v16, %v619_v18 }
 0x4c2   :  { %v625_v21 = vmul.f32 %v623_v19, %v605_v5  ;;  %v624_v22 = vmul.f32 %v623_v19, %v595_v57 }
 0x4c4   :  { %v629_v23 = vsub.f32 %v1122_v20, %v625_v21 }
 0x4c6   :  { %v630_v24 = vadd.f32 %v629_v23, %v624_v22 }
 0x4c8   :  { %v631_v25 = vpack.c.bf16 %v630_v24, %v630_v24 }
 0x4ca   :  { %710 = vmatmul.bf16.vlgmr.msrb.gmra.mxu0 %v631_v25 }
 0x547   :  { %v711_v27 = vpop.f32.mrf.mxu0 }
 0x548   :  { %v712_v28 = vadd.f32 %v1123_v26, %v711_v27 }
 0x54a   :  { %v715_v29 = vmax.f32 %v712_v28, 0.0 }
 0x54c   :  { %720 = vadd.xlane.f32.xlu2 %v715_v29  ;;  %v722_v30 = vmul.f32 %v715_v29, %v715_v29 }
 0x54e   :  { %723 = vadd.xlane.f32.xlu0 %v722_v30 }
 0x54f   :  { %v713_v31 = vpop.f32.mrf.mxu0 }
 0x5bf   :  { %v721_v40 = vpop.xlane.xlu2 %720 }
 0x5c0   :  { %v725_v41 = vmul.f32 0.03125, %v721_v40 }
 0x5c1   :  { %v724_v42 = vpop.xlane.xlu0 %723 }
 0x5c2   :  { %v727_v43 = vmul.f32 %v725_v41, %v725_v41  ;;  %v726_v44 = vmul.f32 0.03125, %v724_v42 }
 0x5c4   :  { %v728_v45 = vsub.f32 %v726_v44, %v727_v43 }
 0x5c6   :  { %v729_v46 = vadd.f32 1e-05, %v728_v45 }
 0x5c8   :  { %1135 = vrsqrt.f32 %v729_v46  ;;  %vm736_vm13 = vweird.f32 %v729_v46 }
 0x5ce   :  { %v1136_v47 = vpop.eup %1135 }
 0x5cf   :  { %v731_v48 = vmul.f32 %v1136_v47, %v729_v46  ;;  %vm737_vm12 = vweird.f32 %v1136_v47 }
 0x5d0   :  { %vm738_vm14 = vmor %vm736_vm13, %vm737_vm12 }
 0x5d1   :  { %v732_v49 = vmul.f32 %v1136_v47, %v731_v48 }
 0x5d3   :  { %v733_v50 = vmul.f32 0.5, %v732_v49 }
 0x5d5   :  { %v734_v51 = vsub.f32 1.5, %v733_v50 }
 0x5d7   :  { %v735_v53 = vmul.f32 %v1136_v47, %v734_v51 }
 0x5d9   :  { %v739_v54 = vsel %vm738_vm14, %v1136_v47, %v735_v53 }
 0x5da   :  { %v743_v55 = vmul.f32 %v1124_v52, %v739_v54 }
 0x5dc   :  { %v745_v57 = vmul.f32 %v743_v55, %v725_v41  ;;  %v744_v58 = vmul.f32 %v743_v55, %v715_v29 }
 0x5de   :  { %v749_v59 = vsub.f32 %v1125_v56, %v745_v57 }
 0x5e0   :  { %v750_v60 = vadd.f32 %v749_v59, %v744_v58 }
 0x5e2   :  { %v751_v61 = vpack.c.bf16 %v750_v60, %v750_v60 }
 0x5e4   :  { %828 = vmatmul.bf16.vlgmr.msrb.gmra.mxu1 %v751_v61 }
 0x661   :  { %v829_v63 = vpop.f32.mrf.mxu1 }
 0x662   :  { %v830_v0 = vadd.f32 %v1126_v62, %v829_v63 }
 0x664   :  { %833 = vst [vmem:[#allocation16] sm:$0xff] %v830_v0 }
 0x665   :  { %844 = dma.vmem_to_hbm [thread:$0]  %s840_s23, 128, %s842_s27, [#allocation4]  }
 0x669   :  { %v831_v1 = vpop.f32.mrf.mxu1 }
 0x66a   :  { %1363 = dma.done.wait [#allocation4], 128  }
 0x66b   :  { %1364 = vsyncadd [#allocation4], 4294967168 }
 0x66c   :  { %849 = vsyncpa [#allocation3], 1 }
 0x66d   :  { %850 = vsyncpa [#allocation6], 1 }
 0x66e   :  { %851 = vsyncpa [#allocation9], 1 }
 0x66f   :  { %852 = vsyncpa [#allocation12], 1 }
 0x670   :  { %853 = vsyncpa [#allocation15], 1 }
 0x671   :  { %854 = vsyncpa [#allocation4], 1 }

</bundles_post_ra>
